<compile_context>
chip_gen: v7x
topology: tpu7x:2x2x1
jax: 0.10.0
libtpu: 0.0.40
codegen_flags: <defaults>
</compile_context>

<pallas_src>
import jax
import jax.numpy as jnp
from jax import lax
from jax.experimental import pallas as pl
from jax.experimental.pallas import tpu as pltpu

# Safe on every generation: below v7x's 64 MiB physical VMEM, above the 16/32 MiB
# scoped defaults on v5e / v6e+v7x.  (All blocks below are tiny anyway.)
_VMEM_LIMIT = 48 * 1024 * 1024


# ----------------------------- Pallas kernels -------------------------------

def qkv_kernel(x_ref, wq_ref, wk_ref, wv_ref, bq_ref, bk_ref, bv_ref,
               q_ref, k_ref, v_ref, qacc, kacc, vacc):
    """Fused head-major QKV projection.

    x_ref : (1, tq, tk) bf16     one row-tile of one batch element
    w*_ref: (1, tk, D)  bf16     per-head weight slice (scale folded into wq)
    b*_ref: (1, 1, D)   f32      per-head bias
    q/k/v : (1, 1, tq, D)        head-major outputs
    Grid  : (B, N//tq, H, E//tk) -- K (last axis) is the reduction.
    """
    kk = pl.program_id(3)

    @pl.when(kk == 0)
    def _():
        qacc[...] = jnp.zeros_like(qacc)
        kacc[...] = jnp.zeros_like(kacc)
        vacc[...] = jnp.zeros_like(vacc)

    x = x_ref[0]                                   # (tq, tk) bf16, read once, 3 matmuls
    qacc[...] += jnp.dot(x, wq_ref[0], preferred_element_type=jnp.float32)
    kacc[...] += jnp.dot(x, wk_ref[0], preferred_element_type=jnp.float32)
    vacc[...] += jnp.dot(x, wv_ref[0], preferred_element_type=jnp.float32)

    @pl.when(kk == pl.num_programs(3) - 1)
    def _():
        # bias only in the finalize step, outside the hot accumulation loop
        q_ref[0, 0] = (qacc[...] + bq_ref[0]).astype(q_ref.dtype)
        k_ref[0, 0] = (kacc[...] + bk_ref[0]).astype(k_ref.dtype)
        v_ref[0, 0] = (vacc[...] + bv_ref[0]).astype(v_ref.dtype)


def flash_attn_kernel(q_ref, k_ref, v_ref, o_ref, m_sc, l_sc, acc_sc):
    """Flash-style online-softmax attention for one (batch, head, q-tile, kv-tile).

    q_ref: (1, 1, tq, D) bf16 (already scaled by 1/sqrt(E))
    k_ref/v_ref: (1, 1, tkv, D) bf16
    o_ref: (1, 1, tq, D)
    Grid : (B, H, N//tq, N//tkv) -- kv (last axis) is the online-softmax reduction.
    """
    ki = pl.program_id(3)

    @pl.when(ki == 0)
    def _():
        m_sc[...] = jnp.full_like(m_sc, -jnp.inf)
        l_sc[...] = jnp.zeros_like(l_sc)
        acc_sc[...] = jnp.zeros_like(acc_sc)

    q = q_ref[0, 0]                                # (tq,  D) bf16
    k = k_ref[0, 0]                                # (tkv, D) bf16
    v = v_ref[0, 0]                                # (tkv, D) bf16

    # energy tile = q @ k^T as a last-dim contraction (no materialized transpose),
    # bf16 operands on the MXU, f32 accumulation.
    s = lax.dot_general(q, k, (((1,), (1,)), ((), ())),
                        preferred_element_type=jnp.float32)       # (tq, tkv) f32

    # Numerically-stable online softmax; kept in f32 (v5e VPU/EUP have no bf16).
    m_prev = m_sc[...]
    m_new = jnp.maximum(m_prev, jnp.max(s, axis=-1, keepdims=True))
    alpha = jnp.exp(m_prev - m_new)
    p = jnp.exp(s - m_new)
    l_sc[...] = alpha * l_sc[...] + jnp.sum(p, axis=-1, keepdims=True)
    acc_sc[...] = alpha * acc_sc[...] + jnp.dot(p.astype(v.dtype), v,
                                                preferred_element_type=jnp.float32)
    m_sc[...] = m_new

    @pl.when(ki == pl.num_programs(3) - 1)
    def _():
        inv_l = pl.reciprocal(l_sc[...], approx=True)             # EUP slot
        o_ref[0, 0] = (acc_sc[...] * inv_l).astype(o_ref.dtype)


def proj_kernel(a_ref, w_ref, b_ref, o_ref, acc_ref):
    """Output projection consuming head-major attention output directly.

    a_ref: (1, 1, tq, D) bf16  attention output of head h
    w_ref: (1, D, tn)    bf16  projection weight rows for head h
    b_ref: (1, tn)       f32
    o_ref: (1, tq, tn)         lane-dense output slab
    Grid : (B, N//tq, E//tn, H) -- H (last axis) is the reduction (= merge heads).
    """
    h = pl.program_id(3)

    @pl.when(h == 0)
    def _():
        acc_ref[...] = jnp.zeros_like(acc_ref)

    acc_ref[...] += jnp.dot(a_ref[0, 0], w_ref[0],
                            preferred_element_type=jnp.float32)

    @pl.when(h == pl.num_programs(3) - 1)
    def _():
        o_ref[0] = (acc_ref[...] + b_ref[...]).astype(o_ref.dtype)


# ----------------------------- tiling helper --------------------------------

def _pick_tile(dim, pref, align):
    """Largest tile <= pref that divides `dim` and is a multiple of `align`.

    Falls back to the full dim, which is always a legal BlockSpec block size.
    """
    if dim <= pref:
        return dim
    t = (pref // align) * align
    while t >= align:
        if dim % t == 0:
            return t
        t -= align
    return dim


# ----------------------------- pallas_call wrappers --------------------------

def pallas_qkv_projection(x, wq, wk, wv, bq, bk, bv, *, tq=256, tk=512,
                          out_dtype=jnp.bfloat16):
    """x: (B, N, E) bf16 -> q, k, v each (B, H, N, D) head-major."""
    B, N, E = x.shape
    H, _, D = wq.shape
    tq = _pick_tile(N, tq, 8)
    tk = _pick_tile(E, tk, 128)
    grid = (B, N // tq, H, E // tk)

    qkv_shape = jax.ShapeDtypeStruct((B, H, N, D), out_dtype)
    out_spec = pl.BlockSpec((1, 1, tq, D), lambda b, i, h, k: (b, h, i, 0))

    return pl.pallas_call(
        qkv_kernel,
        out_shape=(qkv_shape, qkv_shape, qkv_shape),
        grid=grid,
        in_specs=[
            pl.BlockSpec((1, tq, tk), lambda b, i, h, k: (b, i, k)),
            pl.BlockSpec((1, tk, D), lambda b, i, h, k: (h, k, 0)),
            pl.BlockSpec((1, tk, D), lambda b, i, h, k: (h, k, 0)),
            pl.BlockSpec((1, tk, D), lambda b, i, h, k: (h, k, 0)),
            pl.BlockSpec((1, 1, D), lambda b, i, h, k: (h, 0, 0)),
            pl.BlockSpec((1, 1, D), lambda b, i, h, k: (h, 0, 0)),
            pl.BlockSpec((1, 1, D), lambda b, i, h, k: (h, 0, 0)),
        ],
        out_specs=(out_spec, out_spec, out_spec),
        scratch_shapes=[pltpu.VMEM((tq, D), jnp.float32)] * 3,
        compiler_params=pltpu.CompilerParams(
            dimension_semantics=("parallel", "parallel", "parallel", "arbitrary"),
            vmem_limit_bytes=_VMEM_LIMIT),
    )(x, wq, wk, wv, bq, bk, bv)


def pallas_flash_attention(q, k, v, *, tq=256, tkv=256, out_dtype=jnp.bfloat16):
    """q, k, v: (B, H, N, D) -> attention output (B, H, N, D)."""
    B, H, N, D = q.shape
    tq = _pick_tile(N, tq, 8)
    tkv = _pick_tile(N, tkv, 8)
    grid = (B, H, N // tq, N // tkv)

    return pl.pallas_call(
        flash_attn_kernel,
        out_shape=jax.ShapeDtypeStruct((B, H, N, D), out_dtype),
        grid=grid,
        in_specs=[
            pl.BlockSpec((1, 1, tq, D), lambda b, h, qi, ki: (b, h, qi, 0)),
            pl.BlockSpec((1, 1, tkv, D), lambda b, h, qi, ki: (b, h, ki, 0)),
            pl.BlockSpec((1, 1, tkv, D), lambda b, h, qi, ki: (b, h, ki, 0)),
        ],
        out_specs=pl.BlockSpec((1, 1, tq, D), lambda b, h, qi, ki: (b, h, qi, 0)),
        scratch_shapes=[
            pltpu.VMEM((tq, 1), jnp.float32),    # running max
            pltpu.VMEM((tq, 1), jnp.float32),    # running sum
            pltpu.VMEM((tq, D), jnp.float32),    # running weighted-V accumulator
        ],
        compiler_params=pltpu.CompilerParams(
            dimension_semantics=("parallel", "parallel", "parallel", "arbitrary"),
            vmem_limit_bytes=_VMEM_LIMIT),
    )(q, k, v)


def pallas_head_merge_projection(a, wp, bp, *, tq=256, tn=256, out_dtype=jnp.float32):
    """a: (B, H, N, D) head-major -> (B, N, E) = concat-heads @ W_proj + b_proj."""
    B, H, N, D = a.shape
    E = wp.shape[2]
    tq = _pick_tile(N, tq, 8)
    tn = _pick_tile(E, tn, 128)
    grid = (B, N // tq, E // tn, H)

    return pl.pallas_call(
        proj_kernel,
        out_shape=jax.ShapeDtypeStruct((B, N, E), out_dtype),
        grid=grid,
        in_specs=[
            pl.BlockSpec((1, 1, tq, D), lambda b, i, j, h: (b, h, i, 0)),
            pl.BlockSpec((1, D, tn), lambda b, i, j, h: (h, 0, j)),
            pl.BlockSpec((1, tn), lambda b, i, j, h: (0, j)),
        ],
        out_specs=pl.BlockSpec((1, tq, tn), lambda b, i, j, h: (b, i, j)),
        scratch_shapes=[pltpu.VMEM((tq, tn), jnp.float32)],
        compiler_params=pltpu.CompilerParams(
            dimension_semantics=("parallel", "parallel", "parallel", "arbitrary"),
            vmem_limit_bytes=_VMEM_LIMIT),
    )(a, wp, bp)


# ----------------------------- parameter prep (one-time) ---------------------

def prepare_params(params, num_heads, compute_dtype=jnp.bfloat16):
    """Hoisted out of the forward path: head-major weight layout, bf16 casts,
    and 1/sqrt(emb_size) folded into the Q projection."""
    E = params["queries"][0].shape[0]
    H = num_heads
    D = E // H
    # NOTE: the PyTorch module scales by emb_size ** 0.5 (NOT head_dim ** 0.5).
    scale = 1.0 / (E ** 0.5)

    def head_major(wb, s=1.0):
        w, b = wb                                   # w: (E, E) stored (in, out); b: (1, E)
        w_hm = (w * s).reshape(E, H, D).transpose(1, 0, 2)   # (H, E, D)
        b_hm = (b[0] * s).reshape(H, 1, D)                    # (H, 1, D)
        return w_hm.astype(compute_dtype), b_hm.astype(jnp.float32)

    wq, bq = head_major(params["queries"], scale)   # scale folded into Q weights/bias
    wk, bk = head_major(params["keys"])
    wv, bv = head_major(params["values"])

    wp, bp = params["projection"]
    wp_hm = wp.reshape(H, D, E).astype(compute_dtype)         # contract over (H, D)
    bp = bp.astype(jnp.float32)                               # (1, E)

    return dict(wq=wq, bq=bq, wk=wk, bk=bk, wv=wv, bv=bv, wp=wp_hm, bp=bp,
                num_heads=H, emb_size=E, head_dim=D, compute_dtype=compute_dtype)


def multi_head_attention(x, prepped, *, tq=256, tkv=256, tn=256, tk=512):
    """x: (B, N, E) float32 -> (B, N, E) float32."""
    cd = prepped["compute_dtype"]
    xc = x.astype(cd)

    q, k, v = pallas_qkv_projection(
        xc, prepped["wq"], prepped["wk"], prepped["wv"],
        prepped["bq"], prepped["bk"], prepped["bv"],
        tq=tq, tk=tk, out_dtype=cd)                           # (B, H, N, D) each

    attn = pallas_flash_attention(q, k, v, tq=tq, tkv=tkv, out_dtype=cd)

    return pallas_head_merge_projection(attn, prepped["wp"], prepped["bp"],
                                        tq=tq, tn=tn, out_dtype=x.dtype)


# ----------------------------- reference (pure JAX, f32) ---------------------

def reference_mha(x, params, num_heads):
    B, N, E = x.shape
    D = E // num_heads

    def lin(t, wb):
        w, b = wb
        return t @ w + b[0]

    def split(t):
        return t.reshape(B, N, num_heads, D).transpose(0, 2, 1, 3)

    q = split(lin(x, params["queries"]))
    k = split(lin(x, params["keys"]))
    v = split(lin(x, params["values"]))
    energy = jnp.einsum("bhqd,bhkd->bhqk", q, k)
    att = jax.nn.softmax(energy / (E ** 0.5), axis=-1)
    out = jnp.einsum("bhal,bhlv->bhav", att, v)
    out = out.transpose(0, 2, 1, 3).reshape(B, N, E)
    return lin(out, params["projection"])


# ----------------------------- main ------------------------------------------

if __name__ == "__main__":
    B, N, E, H = 2, 8, 32, 4
    dropout = 0.1  # identity at inference (TODO(synk): dropout path not implemented)

    key = jax.random.PRNGKey(0)
    keys = jax.random.split(key, 9)

    def init_linear(kw, kb, in_dim, out_dim):
        # PyTorch nn.Linear weight is (out, in); stored here pre-transposed (in, out).
        w = 0.02 * jax.random.normal(kw, (in_dim, out_dim), dtype=jnp.float32)
        b = 0.02 * jax.random.normal(kb, (1, out_dim), dtype=jnp.float32)
        return w, b

    params = {
        "queries": init_linear(keys[0], keys[1], E, E),
        "keys": init_linear(keys[2], keys[3], E, E),
        "values": init_linear(keys[4], keys[5], E, E),
        "projection": init_linear(keys[6], keys[7], E, E),
    }

    x = jax.random.normal(keys[8], (B, N, E), dtype=jnp.float32)

    prepped = prepare_params(params, H)                    # one-time, outside hot path
    out = multi_head_attention(x, prepped)
    out = jax.block_until_ready(out)

    ref = reference_mha(x, params, H)
    assert out.shape == (B, N, E)
    # Tolerance accounts for bf16 MXU operands / bf16 intermediates and
    # pl.reciprocal(approx=True) in the softmax normalization.
    max_err = jnp.max(jnp.abs(out - ref))
    assert jnp.allclose(out, ref, atol=1e-2, rtol=1e-2), \
        f"mismatch vs reference (max abs err {max_err})"

    print("KERNEL_OK")
</pallas_src>

<mosaic_0001>
module attributes {stable_mosaic.version = 11 : i64} {
  func.func @qkv_kernel(%arg0: i32, %arg1: i32, %arg2: i32, %arg3: i32, %arg4: memref<1x8x32xbf16, #tpu.memory_space<vmem>>, %arg5: memref<1x32x8xbf16, #tpu.memory_space<vmem>>, %arg6: memref<1x32x8xbf16, #tpu.memory_space<vmem>>, %arg7: memref<1x32x8xbf16, #tpu.memory_space<vmem>>, %arg8: memref<1x1x8xf32, #tpu.memory_space<vmem>>, %arg9: memref<1x1x8xf32, #tpu.memory_space<vmem>>, %arg10: memref<1x1x8xf32, #tpu.memory_space<vmem>>, %arg11: memref<1x1x8x8xbf16, #tpu.memory_space<vmem>>, %arg12: memref<1x1x8x8xbf16, #tpu.memory_space<vmem>>, %arg13: memref<1x1x8x8xbf16, #tpu.memory_space<vmem>>, %arg14: memref<8x8xf32, #tpu.memory_space<vmem>>, %arg15: memref<8x8xf32, #tpu.memory_space<vmem>>, %arg16: memref<8x8xf32, #tpu.memory_space<vmem>>) attributes {dimension_semantics = [#tpu.dimension_semantics<parallel>, #tpu.dimension_semantics<parallel>, #tpu.dimension_semantics<parallel>, #tpu.dimension_semantics<arbitrary>], iteration_bounds = array<i64: 2, 1, 4, 1>, scalar_prefetch = 0 : i64, scratch_operands = 3 : i64, tpu.core_type = #tpu.core_type<tc>, window_params = [{transform_indices = @transform_0, window_bounds = array<i64: 1, 8, 32>}, {transform_indices = @transform_1, window_bounds = array<i64: 1, 32, 8>}, {transform_indices = @transform_2, window_bounds = array<i64: 1, 32, 8>}, {transform_indices = @transform_3, window_bounds = array<i64: 1, 32, 8>}, {transform_indices = @transform_4, window_bounds = array<i64: 1, 1, 8>}, {transform_indices = @transform_5, window_bounds = array<i64: 1, 1, 8>}, {transform_indices = @transform_6, window_bounds = array<i64: 1, 1, 8>}, {transform_indices = @transform_7, window_bounds = array<i64: 1, 1, 8, 8>}, {transform_indices = @transform_8, window_bounds = array<i64: 1, 1, 8, 8>}, {transform_indices = @transform_9, window_bounds = array<i64: 1, 1, 8, 8>}]} {
    %c0_i32 = arith.constant 0 : i32
    %0 = arith.cmpi eq, %arg3, %c0_i32 : i32
    %1 = arith.extui %0 : i1 to i32
    %c0_i32_0 = arith.constant 0 : i32
    %2 = arith.cmpi ne, %1, %c0_i32_0 : i32
    scf.if %2 {
      %cst_28 = arith.constant 0.000000e+00 : f32
      %26 = vector.broadcast %cst_28 : f32 to vector<8x8xf32>
      %c0_29 = arith.constant 0 : index
      %c0_30 = arith.constant 0 : index
      %27 = vector.load %arg14[%c0_29, %c0_30] : memref<8x8xf32, #tpu.memory_space<vmem>>, vector<8x8xf32>
      tpu.vector_store %arg14[%c0_29, %c0_30], %26 {strides = array<i32>} : memref<8x8xf32, #tpu.memory_space<vmem>>, vector<8x8xf32>,
      %cst_31 = arith.constant 0.000000e+00 : f32
      %28 = vector.broadcast %cst_31 : f32 to vector<8x8xf32>
      %c0_32 = arith.constant 0 : index
      %c0_33 = arith.constant 0 : index
      %29 = vector.load %arg15[%c0_32, %c0_33] : memref<8x8xf32, #tpu.memory_space<vmem>>, vector<8x8xf32>
      tpu.vector_store %arg15[%c0_32, %c0_33], %28 {strides = array<i32>} : memref<8x8xf32, #tpu.memory_space<vmem>>, vector<8x8xf32>,
      %cst_34 = arith.constant 0.000000e+00 : f32
      %30 = vector.broadcast %cst_34 : f32 to vector<8x8xf32>
      %c0_35 = arith.constant 0 : index
      %c0_36 = arith.constant 0 : index
      %31 = vector.load %arg16[%c0_35, %c0_36] : memref<8x8xf32, #tpu.memory_space<vmem>>, vector<8x8xf32>
      tpu.vector_store %arg16[%c0_35, %c0_36], %30 {strides = array<i32>} : memref<8x8xf32, #tpu.memory_space<vmem>>, vector<8x8xf32>,
    } else {
    }
    %c0 = arith.constant 0 : index
    %c0_1 = arith.constant 0 : index
    %c0_2 = arith.constant 0 : index
    %3 = vector.load %arg4[%c0, %c0_1, %c0_2] : memref<1x8x32xbf16, #tpu.memory_space<vmem>>, vector<1x8x32xbf16>
    %4 = vector.shape_cast %3 : vector<1x8x32xbf16> to vector<8x32xbf16>
    %c0_3 = arith.constant 0 : index
    %c0_4 = arith.constant 0 : index
    %5 = vector.load %arg14[%c0_3, %c0_4] : memref<8x8xf32, #tpu.memory_space<vmem>>, vector<8x8xf32>
    %c0_5 = arith.constant 0 : index
    %c0_6 = arith.constant 0 : index
    %c0_7 = arith.constant 0 : index
    %6 = vector.load %arg5[%c0_5, %c0_6, %c0_7] : memref<1x32x8xbf16, #tpu.memory_space<vmem>>, vector<1x32x8xbf16>
    %7 = vector.shape_cast %6 : vector<1x32x8xbf16> to vector<32x8xbf16>
    %cst = arith.constant dense<0.000000e+00> : vector<8x8xf32>
    %8 = tpu.matmul %4, %7, %cst {dimension_numbers = #tpu.dot_dimension_numbers<[1], [0], [0], [1], [0, 0, 1, 1], [], []>} : vector<8x32xbf16>, vector<32x8xbf16>, vector<8x8xf32> -> vector<8x8xf32>
    %9 = arith.addf %5, %8 : vector<8x8xf32>
    %c0_8 = arith.constant 0 : index
    %c0_9 = arith.constant 0 : index
    %10 = vector.load %arg14[%c0_8, %c0_9] : memref<8x8xf32, #tpu.memory_space<vmem>>, vector<8x8xf32>
    tpu.vector_store %arg14[%c0_8, %c0_9], %9 {strides = array<i32>} : memref<8x8xf32, #tpu.memory_space<vmem>>, vector<8x8xf32>,
    %c0_10 = arith.constant 0 : index
    %c0_11 = arith.constant 0 : index
    %11 = vector.load %arg15[%c0_10, %c0_11] : memref<8x8xf32, #tpu.memory_space<vmem>>, vector<8x8xf32>
    %c0_12 = arith.constant 0 : index
    %c0_13 = arith.constant 0 : index
    %c0_14 = arith.constant 0 : index
    %12 = vector.load %arg6[%c0_12, %c0_13, %c0_14] : memref<1x32x8xbf16, #tpu.memory_space<vmem>>, vector<1x32x8xbf16>
    %13 = vector.shape_cast %12 : vector<1x32x8xbf16> to vector<32x8xbf16>
    %cst_15 = arith.constant dense<0.000000e+00> : vector<8x8xf32>
    %14 = tpu.matmul %4, %13, %cst_15 {dimension_numbers = #tpu.dot_dimension_numbers<[1], [0], [0], [1], [0, 0, 1, 1], [], []>} : vector<8x32xbf16>, vector<32x8xbf16>, vector<8x8xf32> -> vector<8x8xf32>
    %15 = arith.addf %11, %14 : vector<8x8xf32>
    %c0_16 = arith.constant 0 : index
    %c0_17 = arith.constant 0 : index
    %16 = vector.load %arg15[%c0_16, %c0_17] : memref<8x8xf32, #tpu.memory_space<vmem>>, vector<8x8xf32>
    tpu.vector_store %arg15[%c0_16, %c0_17], %15 {strides = array<i32>} : memref<8x8xf32, #tpu.memory_space<vmem>>, vector<8x8xf32>,
    %c0_18 = arith.constant 0 : index
    %c0_19 = arith.constant 0 : index
    %17 = vector.load %arg16[%c0_18, %c0_19] : memref<8x8xf32, #tpu.memory_space<vmem>>, vector<8x8xf32>
    %c0_20 = arith.constant 0 : index
    %c0_21 = arith.constant 0 : index
    %c0_22 = arith.constant 0 : index
    %18 = vector.load %arg7[%c0_20, %c0_21, %c0_22] : memref<1x32x8xbf16, #tpu.memory_space<vmem>>, vector<1x32x8xbf16>
    %19 = vector.shape_cast %18 : vector<1x32x8xbf16> to vector<32x8xbf16>
    %cst_23 = arith.constant dense<0.000000e+00> : vector<8x8xf32>
    %20 = tpu.matmul %4, %19, %cst_23 {dimension_numbers = #tpu.dot_dimension_numbers<[1], [0], [0], [1], [0, 0, 1, 1], [], []>} : vector<8x32xbf16>, vector<32x8xbf16>, vector<8x8xf32> -> vector<8x8xf32>
    %21 = arith.addf %17, %20 : vector<8x8xf32>
    %c0_24 = arith.constant 0 : index
    %c0_25 = arith.constant 0 : index
    %22 = vector.load %arg16[%c0_24, %c0_25] : memref<8x8xf32, #tpu.memory_space<vmem>>, vector<8x8xf32>
    tpu.vector_store %arg16[%c0_24, %c0_25], %21 {strides = array<i32>} : memref<8x8xf32, #tpu.memory_space<vmem>>, vector<8x8xf32>,
    %c0_i32_26 = arith.constant 0 : i32
    %23 = arith.cmpi eq, %arg3, %c0_i32_26 : i32
    %24 = arith.extui %23 : i1 to i32
    %c0_i32_27 = arith.constant 0 : i32
    %25 = arith.cmpi ne, %24, %c0_i32_27 : i32
    scf.if %25 {
      %c0_28 = arith.constant 0 : index
      %c0_29 = arith.constant 0 : index
      %26 = vector.load %arg14[%c0_28, %c0_29] : memref<8x8xf32, #tpu.memory_space<vmem>>, vector<8x8xf32>
      %c0_30 = arith.constant 0 : index
      %c0_31 = arith.constant 0 : index
      %c0_32 = arith.constant 0 : index
      %27 = vector.load %arg8[%c0_30, %c0_31, %c0_32] : memref<1x1x8xf32, #tpu.memory_space<vmem>>, vector<1x1x8xf32>
      %28 = vector.shape_cast %27 : vector<1x1x8xf32> to vector<1x8xf32>
      %29 = vector.broadcast %28 : vector<1x8xf32> to vector<8x8xf32>
      %30 = arith.addf %26, %29 : vector<8x8xf32>
      %31 = arith.truncf %30 : vector<8x8xf32> to vector<8x8xbf16>
      %c0_33 = arith.constant 0 : index
      %c0_34 = arith.constant 0 : index
      %c0_35 = arith.constant 0 : index
      %c0_36 = arith.constant 0 : index
      %32 = vector.load %arg11[%c0_33, %c0_34, %c0_35, %c0_36] : memref<1x1x8x8xbf16, #tpu.memory_space<vmem>>, vector<1x1x8x8xbf16>
      %33 = vector.shape_cast %32 : vector<1x1x8x8xbf16> to vector<8x8xbf16>
      %34 = vector.shape_cast %31 : vector<8x8xbf16> to vector<1x1x8x8xbf16>
      tpu.vector_store %arg11[%c0_33, %c0_34, %c0_35, %c0_36], %34 {strides = array<i32>} : memref<1x1x8x8xbf16, #tpu.memory_space<vmem>>, vector<1x1x8x8xbf16>,
      %c0_37 = arith.constant 0 : index
      %c0_38 = arith.constant 0 : index
      %35 = vector.load %arg15[%c0_37, %c0_38] : memref<8x8xf32, #tpu.memory_space<vmem>>, vector<8x8xf32>
      %c0_39 = arith.constant 0 : index
      %c0_40 = arith.constant 0 : index
      %c0_41 = arith.constant 0 : index
      %36 = vector.load %arg9[%c0_39, %c0_40, %c0_41] : memref<1x1x8xf32, #tpu.memory_space<vmem>>, vector<1x1x8xf32>
      %37 = vector.shape_cast %36 : vector<1x1x8xf32> to vector<1x8xf32>
      %38 = vector.broadcast %37 : vector<1x8xf32> to vector<8x8xf32>
      %39 = arith.addf %35, %38 : vector<8x8xf32>
      %40 = arith.truncf %39 : vector<8x8xf32> to vector<8x8xbf16>
      %c0_42 = arith.constant 0 : index
      %c0_43 = arith.constant 0 : index
      %c0_44 = arith.constant 0 : index
      %c0_45 = arith.constant 0 : index
      %41 = vector.load %arg12[%c0_42, %c0_43, %c0_44, %c0_45] : memref<1x1x8x8xbf16, #tpu.memory_space<vmem>>, vector<1x1x8x8xbf16>
      %42 = vector.shape_cast %41 : vector<1x1x8x8xbf16> to vector<8x8xbf16>
      %43 = vector.shape_cast %40 : vector<8x8xbf16> to vector<1x1x8x8xbf16>
      tpu.vector_store %arg12[%c0_42, %c0_43, %c0_44, %c0_45], %43 {strides = array<i32>} : memref<1x1x8x8xbf16, #tpu.memory_space<vmem>>, vector<1x1x8x8xbf16>,
      %c0_46 = arith.constant 0 : index
      %c0_47 = arith.constant 0 : index
      %44 = vector.load %arg16[%c0_46, %c0_47] : memref<8x8xf32, #tpu.memory_space<vmem>>, vector<8x8xf32>
      %c0_48 = arith.constant 0 : index
      %c0_49 = arith.constant 0 : index
      %c0_50 = arith.constant 0 : index
      %45 = vector.load %arg10[%c0_48, %c0_49, %c0_50] : memref<1x1x8xf32, #tpu.memory_space<vmem>>, vector<1x1x8xf32>
      %46 = vector.shape_cast %45 : vector<1x1x8xf32> to vector<1x8xf32>
      %47 = vector.broadcast %46 : vector<1x8xf32> to vector<8x8xf32>
      %48 = arith.addf %44, %47 : vector<8x8xf32>
      %49 = arith.truncf %48 : vector<8x8xf32> to vector<8x8xbf16>
      %c0_51 = arith.constant 0 : index
      %c0_52 = arith.constant 0 : index
      %c0_53 = arith.constant 0 : index
      %c0_54 = arith.constant 0 : index
      %50 = vector.load %arg13[%c0_51, %c0_52, %c0_53, %c0_54] : memref<1x1x8x8xbf16, #tpu.memory_space<vmem>>, vector<1x1x8x8xbf16>
      %51 = vector.shape_cast %50 : vector<1x1x8x8xbf16> to vector<8x8xbf16>
      %52 = vector.shape_cast %49 : vector<8x8xbf16> to vector<1x1x8x8xbf16>
      tpu.vector_store %arg13[%c0_51, %c0_52, %c0_53, %c0_54], %52 {strides = array<i32>} : memref<1x1x8x8xbf16, #tpu.memory_space<vmem>>, vector<1x1x8x8xbf16>,
    } else {
    }
    return
  }
  func.func @transform_0(%arg0: i32, %arg1: i32, %arg2: i32, %arg3: i32) -> (i32, i32, i32) {
    %c0_i32 = arith.constant 0 : i32
    return %arg0, %arg1, %arg3 : i32, i32, i32
  }
  func.func @transform_1(%arg0: i32, %arg1: i32, %arg2: i32, %arg3: i32) -> (i32, i32, i32) {
    %c0_i32 = arith.constant 0 : i32
    %c0_i32_0 = arith.constant 0 : i32
    return %arg2, %arg3, %c0_i32 : i32, i32, i32
  }
  func.func @transform_2(%arg0: i32, %arg1: i32, %arg2: i32, %arg3: i32) -> (i32, i32, i32) {
    %c0_i32 = arith.constant 0 : i32
    %c0_i32_0 = arith.constant 0 : i32
    return %arg2, %arg3, %c0_i32 : i32, i32, i32
  }
  func.func @transform_3(%arg0: i32, %arg1: i32, %arg2: i32, %arg3: i32) -> (i32, i32, i32) {
    %c0_i32 = arith.constant 0 : i32
    %c0_i32_0 = arith.constant 0 : i32
    return %arg2, %arg3, %c0_i32 : i32, i32, i32
  }
  func.func @transform_4(%arg0: i32, %arg1: i32, %arg2: i32, %arg3: i32) -> (i32, i32, i32) {
    %c0_i32 = arith.constant 0 : i32
    %c0_i32_0 = arith.constant 0 : i32
    %c0_i32_1 = arith.constant 0 : i32
    return %arg2, %c0_i32, %c0_i32_0 : i32, i32, i32
  }
  func.func @transform_5(%arg0: i32, %arg1: i32, %arg2: i32, %arg3: i32) -> (i32, i32, i32) {
    %c0_i32 = arith.constant 0 : i32
    %c0_i32_0 = arith.constant 0 : i32
    %c0_i32_1 = arith.constant 0 : i32
    return %arg2, %c0_i32, %c0_i32_0 : i32, i32, i32
  }
  func.func @transform_6(%arg0: i32, %arg1: i32, %arg2: i32, %arg3: i32) -> (i32, i32, i32) {
    %c0_i32 = arith.constant 0 : i32
    %c0_i32_0 = arith.constant 0 : i32
    %c0_i32_1 = arith.constant 0 : i32
    return %arg2, %c0_i32, %c0_i32_0 : i32, i32, i32
  }
  func.func @transform_7(%arg0: i32, %arg1: i32, %arg2: i32, %arg3: i32) -> (i32, i32, i32, i32) {
    %c0_i32 = arith.constant 0 : i32
    %c0_i32_0 = arith.constant 0 : i32
    return %arg0, %arg2, %arg1, %c0_i32 : i32, i32, i32, i32
  }
  func.func @transform_8(%arg0: i32, %arg1: i32, %arg2: i32, %arg3: i32) -> (i32, i32, i32, i32) {
    %c0_i32 = arith.constant 0 : i32
    %c0_i32_0 = arith.constant 0 : i32
    return %arg0, %arg2, %arg1, %c0_i32 : i32, i32, i32, i32
  }
  func.func @transform_9(%arg0: i32, %arg1: i32, %arg2: i32, %arg3: i32) -> (i32, i32, i32, i32) {
    %c0_i32 = arith.constant 0 : i32
    %c0_i32_0 = arith.constant 0 : i32
    return %arg0, %arg2, %arg1, %c0_i32 : i32, i32, i32, i32
  }
}

</mosaic_0001>

<bundles_post_ra>
// kernel: tpu_custom_call.1
= control target key start
LH: loop header
LB: loop body
LE: loop exit
PB: predicated region body
PF: predicated region fallthrough
CT: control target
= control target key end

     0   :  { %15 = vsyncpa [#allocation6], 0  ;;  %s1719_s0 = inlined_call_operand.vmem [shape: bf16[2,8,32], index: 0, kind: input, shape index: {}]   ;;  %s1720_s1 = inlined_call_operand.vmem [shape: bf16[4,32,8], index: 1, kind: input, shape index: {}]   ;;  %s1721_s2 = inlined_call_operand.vmem [shape: bf16[4,32,8], index: 2, kind: input, shape index: {}]   ;;  %s1722_s3 = inlined_call_operand.vmem [shape: bf16[4,32,8], index: 3, kind: input, shape index: {}]   ;;  %s1723_s4 = inlined_call_operand.vmem [shape: f32[4,1,8], index: 4, kind: input, shape index: {}]   ;;  %s1724_s5 = inlined_call_operand.vmem [shape: f32[4,1,8], index: 5, kind: input, shape index: {}]   ;;  %s1725_s6 = inlined_call_operand.vmem [shape: f32[4,1,8], index: 6, kind: input, shape index: {}]   ;;  %s1726_s7 = inlined_call_operand.hbm [shape: bf16[2,4,8,8], index: 7, kind: output, shape index: {0}]   ;;  %s1727_s8 = inlined_call_operand.hbm [shape: bf16[2,4,8,8], index: 8, kind: output, shape index: {1}]   ;;  %s1728_s9 = inlined_call_operand.hbm [shape: bf16[2,4,8,8], index: 9, kind: output, shape index: {2}]  }
   0x1   :  { %17 = vsyncpa [#allocation6 + $0x1], 0 }
   0x2   :  { %18 = vsyncpa [#allocation8], 0 }
   0x3   :  { %20 = vsyncpa [#allocation8 + $0x1], 0  ;;  %s1451_s30 = smov 0   ;;  %s1453_s10 = smov 0  }
   0x4   :  { %s1455_s11 = smov 0   ;;  %s1457_s12 = smov 0  }
   0x5   :  { %s1459_s13 = smov 0   ;;  %s1461_s14 = smov 0  }
   0x6   :  { %s1463_s15 = smov 0   ;;  %s1465_s16 = smov 0  }
   0x7 LB: > { %1739 = sst [smem:[#allocation12_spill]] %s1366_s30  ;;  %s1730_s17 = sadd.s32 4294967295, %s1394_s16   ;;  %s1394_s16 = sphi %s1465_s16, %s26_s16   ;;  %s1390_s15 = sphi %s1463_s15, %s1759_s15   ;;  %s1386_s14 = sphi %s1461_s14, %s1758_s14   ;;  %s1382_s13 = sphi %s1459_s13, %s1757_s13   ;;  %s1378_s12 = sphi %s1457_s12, %s1756_s12   ;;  %s1374_s11 = sphi %s1455_s11, %s1755_s11   ;;  %s1370_s10 = sphi %s1453_s10, %s1761_s10   ;;  %s1366_s30 = sphi %s1451_s30, %s1760_s30  }
   0x8   : > { %1740 = sst [smem:[#allocation13_spill]] %s1374_s11  ;;  %s1729_s18 = sadd.s32 4294967294, %s1394_s16  }
   0x9   : > { %1741 = sst [smem:[#allocation14_spill]] %s1386_s14  ;;  %s44_s19 = sadd.s32 1, %s1386_s14 }
   0xa   : > { %1742 = sst [smem:[#allocation15_spill]] %s1390_s15  ;;  %p46_p0 = scmp.ge.s32.totalorder %s44_s19, 4 }
   0xb   : > { %s52_s20 = sadd.s32 1, %s1390_s15  ;;  %p265_p1 = scmp.ne.s32.totalorder %s1374_s11, %s1370_s10 }
   0xc   : > { %p266_p2 = scmp.eq.s32.totalorder %s1730_s17, 7  ;;  %s1763_s19 = smov (%p46_p0, %s44_s19), 0 }
   0xd   : > { %1743 = sst [smem:[#allocation16_spill]] %s1763_s19  ;;  %s1765_s20 = smov (!%p46_p0, %s52_s20), %s1390_s15 }
   0xe   : > { %s249_s21 = ssub.s32 %s1386_s14, %s1763_s19  ;;  %p1504_p3 = por %p266_p2, %p265_p1 }
   0xf   : > { %p54_p4 = scmp.ge.s32.totalorder %s1765_s20, 2  ;;  %p271_p5 = scmp.ne.s32.totalorder %s1370_s10, %s1366_s30 }
  0x10   : > { %p272_p6 = scmp.eq.s32.totalorder %s1729_s18, 7  ;;  %p1081_p7 = scmp.ge.s32.totalorder %s1394_s16, 1 }
  0x11   : > { %s1767_s20 = smov (%p54_p4, %s1765_s20), 0  ;;  %p420_p9 = scmp.lt.s32.totalorder %s1394_s16, 9 }
  0x12   : > { %1745 = sst [smem:[#allocation17_spill]] %s1767_s20  ;;  %p1515_p8 = por %p272_p6, %p271_p5 }
  0x13   : > { %s248_s24 = ssub.s32 %s1390_s15, %s1767_s20  ;;  %s255_s25 = sadd.s32 1, %s1374_s11 }
  0x14   : > { %s1746_s23 = scalar_select %p1515_p8, 1, 0 }
  0x15   : > { %s250_s26 = sor.u32 %s249_s21, %s248_s24  ;;  %p421_p10 = pnand %p1081_p7, %p420_p9 }
  0x16   : > { %1747 = sst [smem:[#allocation18_spill]] %s1746_s23  ;;  %p253_p11 = scmp.eq.s32.totalorder %s250_s26, 0  ;;  %vm561_vm0 = vcmask (!%p421_p10), 64512   ;;  %v1396_v0 = vmov (!%p421_p10), 0.0   ;;  %vm1397_vm1 = vmmov (!%p421_p10), 0   ;;  %vm583_vm2 = vcmask (!%p421_p10), 261120  }
  0x17   : > { %424 = sbr.rel (%p421_p10) target bundleno = 329 (0x149), region = 48  ;;  %p518_p12 = scmp.lt.s32.totalorder (!%p421_p10), %s1378_s12, 3  ;;  %1127 = vmatprep.subr.bf16.mxu0 (!%p421_p10), %v1396_v0  ;;  %1135 = vmatprep.subr.bf16.mxu1 (!%p421_p10), %v1396_v0  ;;  %562 = vst.msk [vmem:[#allocation2] sm:$0xff] (!%p421_p10), %vm561_vm0, %v1396_v0  ;;  %563 = vst.msk [vmem:[#allocation3] sm:$0xff] (!%p421_p10), %vm561_vm0, %v1396_v0  ;;  %vm761_vm3 = vcmask (!%p421_p10), 60416  }
  0x18   : > { %s1524_s27 = scalar_select %p253_p11, %s1374_s11, %s255_s25  }
  0x19   : > { %p507_p13 = scmp.lt.s32.totalorder (!%p421_p10), %s1382_s13, 1  ;;  %564 = vst.msk [vmem:[#allocation4] sm:$0xff] (!%p421_p10), %vm561_vm0, %v1396_v0  ;;  %1131 = vmatprep.mubr.msk.bf16.mxu0 (!%p421_p10), %vm1397_vm1, %v1396_v0  ;;  %1139 = vmatprep.mubr.msk.bf16.mxu1 (!%p421_p10), %vm1397_vm1, %v1396_v0  ;;  %s1107_s11 = sshll.u32 (!%p421_p10), %s1382_s13, 2 }
  0x1a   : > { %1748 = sst [smem:[#allocation19_spill]] %s1524_s27 }
  0x1e   : > { %s1532_s28 = scalar_select %p518_p12, %s1378_s12, 3  ;;  %v566_v8 = vld [vmem:[#allocation2] sm:$0xff]  ;;  %v630_v10 = vld [vmem:[#allocation3] sm:$0xff] }
  0x1f   : > { %s508_s29 = scalar_select %p507_p13, %s1382_s13, 1 }
  0x20   : > { %s1115_s21 = sshll.u32 %s1532_s28, 4  ;;  %s549_s17 = scalar_lea.vmem %s1723_s4, %s1532_s28  ;;  %v689_v20 = vld [vmem:[#allocation4] sm:$0xff] }
  0x21   : > { %s525_s26 = scalar_lea.vmem %s1720_s1, %s1115_s21  ;;  %s535_s20 = scalar_lea.vmem %s1721_s2, %s1115_s21  ;;  %v1101_v22 = vld [vmem:[%s549_s17] ss:$0 sm:$0xff] }
  0x22   : > { %v1234_v1 = vld [vmem:[%s525_s26] sm:$0xff]   ;;  %s1085_s19 = sshll.u32 %s508_s29, 2  ;;  %v1235_v2 = vld [vmem:[%s525_s26 + $0x8] sm:$0xff]   ;;  %s545_s27 = scalar_lea.vmem %s1722_s3, %s1115_s21 }
  0x23   : > { %1128 = vmatpush3.bf16.msra.mxu0 %v1234_v1  ;;  %v1236_v3 = vld [vmem:[%s535_s20] sm:$0xff]   ;;  %s516_s30 = scalar_lea.vmem %s1719_s0, %s1085_s19  ;;  %v1238_v4 = vld [vmem:[%s535_s20 + $0x8] sm:$0xff]   ;;  %s808_s19 = sadd.s32 %s1378_s12, %s1107_s11 }
  0x24   : > { %1129 = vmatprep.subr.bf16.mxu0 %v1396_v0  ;;  %1136 = vmatpush3.bf16.msra.mxu1 %v1236_v3  ;;  %v565_v5 = vld [vmem:[%s516_s30] sm:$0xf]  ;;  %v1239_v7 = vld [vmem:[%s545_s27 + $0x8] sm:$0xff]   ;;  %s490_s30 = sand.u32 1, %s1370_s10   ;;  %s552_s13 = scalar_lea.vmem %s1724_s5, %s1532_s28 }
  0x25   : > { %1137 = vmatprep.subr.bf16.mxu1 %v1396_v0  ;;  %v1237_v6 = vld [vmem:[%s545_s27] sm:$0xff]   ;;  %s1561_s18 = sshll.u32 %s490_s30, 2  ;;  %s1568_s27 = sshll.u32 %s808_s19, 6 }
  0x26   : > { %v1102_v26 = vld [vmem:[%s552_s13] ss:$0 sm:$0xff]  ;;  %s492_s29 = scalar_lea.vmem [#allocation5], %s1561_s18  ;;  %s1749_s12 = sadd.s32 4294967295, %s1394_s16  }
  0x27   : > { %1130 = vmatpush3.bf16.msra.mxu0 %v1235_v2  ;;  %s812_s21 = sshll.u32 %s492_s29, 4  ;;  %s1574_s24 = sand.u32 1, %s1749_s12   ;;  %s1585_s21 = int_to_ptr.vmem [resolvable:$true] %s812_s21 }
  0x28   : > { %1143 = vmatprep.subr.bf16.mxu0 %v1396_v0  ;;  %1138 = vmatpush3.bf16.msra.mxu1 %v1238_v4  ;;  %s1738_s25 = scalar_lea.vmem [#allocation7], %s1561_s18  ;;  %s1583_s15 = scalar_lea.hbm %s1726_s7, %s1568_s27 }
  0x29   : > { %s828_s26 = sshll.u32 %s1738_s25, 4  ;;  %s555_s20 = scalar_lea.vmem %s1725_s6, %s1532_s28  ;;  %s1597_s26 = int_to_ptr.vmem [resolvable:$true] %s828_s26 }
  0x2a   : > { %1132 = vmatmul.mubr.msk.bf16.vlgmr.msra.gmra.mrb[0].mxu0 %vm583_vm2, %v565_v5  ;;  %s1595_s12 = scalar_lea.hbm %s1727_s8, %s1568_s27  ;;  %s786_s11 = scalar_lea.sflag [#allocation6], %s490_s30 }
  0x2b   : > { %1144 = vmatpush3.bf16.msra.mxu0 %v1237_v6  ;;  %1147 = vmatprep.mubr.msk.bf16.mxu0 %vm1397_vm1, %v1396_v0  ;;  %s1240_s14 = scalar_lea.vmem %s1585_s21, 64  ;;  %s1398_s17 = smov [#allocation5]  }
  0x2c   : > { %1145 = vmatprep.subr.bf16.mxu0 %v1396_v0  ;;  %1140 = vmatmul.mubr.msk.bf16.vlgmr.msra.gmra.mrb[0].mxu1 %vm583_vm2, %v565_v5  ;;  %p1241_p0 = scmp.ne.s32.totalorder %s1585_s21, %s1240_s14  ;;  %s1244_s19 = sshll.u32 %s1398_s17, 4  ;;  %s1245_s19 = int_to_ptr.vmem [resolvable:$false] %s1244_s19 }
  0x2d   : > { %s1246_s25 = scalar_lea.vmem %s1245_s19, 128  ;;  %p1247_p4 = scmp.lt.s32.totalorder %s1585_s21, %s1245_s19 }
  0x2e   : > { %p1242_p1 = pnand %p1241_p0, %p1504_p3  ;;  %p1248_p5 = scmp.lt.s32.totalorder %s1246_s25, %s1240_s14 }
  0x2f   : > { %1146 = vmatpush3.bf16.msra.mxu0 %v1239_v7 }
  0x30   : > { %p1243_p2 = pneg %p1242_p1  ;;  %p1249_p6 = por %p1248_p5, %p1247_p4 }
  0x32   : > { %1148 = vmatmul.mubr.msk.bf16.vlgmr.msra.gmra.mrb[4].mxu0 %vm583_vm2, %v565_v5  ;;  %p1250_p7 = pnand %p1249_p6, %p1243_p2 }
  0xfd   : > { %v621_v9 = vpop.f32.mrb[0].mxu0 }
  0xfe   : > { %v627_v11 = vadd.f32 %v621_v9, %v566_v8  ;;  %v1133_v12 = vpop.f32.mrb[1].mxu0 }
  0xff   : > { %v624_v13 = vpop.f32.mrb[2].mxu0  ;;  %v681_v14 = vpop.f32.mrb[0].mxu1 }
 0x100   : > { %629 = vst.msk [vmem:[#allocation2] sm:$0xff] %vm561_vm0, %v627_v11  ;;  %v1134_v15 = vpop.f32.mrb[3].mxu0  ;;  %v687_v16 = vadd.f32 %v681_v14, %v630_v10  ;;  %v1141_v17 = vpop.f32.mrb[1].mxu1 }
 0x101   : > { %v684_v18 = vpop.f32.mrb[2].mxu1 }
 0x102   : > { %688 = vst.msk [vmem:[#allocation3] sm:$0xff] %vm561_vm0, %v687_v16  ;;  %v1142_v19 = vpop.f32.mrb[3].mxu1 }
 0x105   : > { %v740_v21 = vpop.f32.mrb[4].mxu0 }
 0x106   : > { %v746_v23 = vadd.f32 %v740_v21, %v689_v20  ;;  %v1149_v24 = vpop.f32.mrb[5].mxu0 }
 0x107   : > { %v743_v25 = vpop.f32.mrb[6].mxu0  ;;  %v751_v27 = vld [vmem:[#allocation2] sm:$0xff] }
 0x108   : > { %747 = vst.msk [vmem:[#allocation4] sm:$0xff] %vm561_vm0, %v746_v23  ;;  %v1150_v28 = vpop.f32.mrb[7].mxu0  ;;  %v759_v29 = vadd.f32 %v1101_v22, %v751_v27 }
 0x109   : > { %v763_v30 = vld [vmem:[#allocation3] sm:$0xff] }
 0x10a   : > { %v771_v31 = vadd.f32 %v1102_v26, %v763_v30  ;;  %v760_v32 = vpack.c.bf16 %v759_v29, %v759_v29 }
 0x10c   : > { %v772_v33 = vpack.c.bf16 %v771_v31, %v771_v31  ;;  %762 = vst.msk [vmem:[%s492_s29] sm:$0xf] %vm761_vm3, %v760_v32 }
 0x10d   : > { %1253 = shalt.err (!%p1250_p7)
}
 0x10e   : > { %s1254_s30 = scalar_lea.hbm %s1583_s15, 64  ;;  %s1258_s13 = scalar_lea.hbm %s1726_s7, 512 }
 0x10f   : > { %p1255_p9 = scmp.ne.s32.totalorder %s1583_s15, %s1254_s30  ;;  %p1259_p12 = scmp.lt.u32.totalorder %s1583_s15, %s1726_s7 }
 0x110   : > { %p1260_p13 = scmp.lt.u32.totalorder %s1258_s13, %s1254_s30  ;;  %p1262_p1 = scmp.lt.u32.totalorder %s1254_s30, %s1583_s15 }
 0x111   : > { %p1256_p10 = pnand %p1255_p9, %p1504_p3 }
 0x112   : > { %p1261_p0 = por %p1260_p13, %p1259_p12 }
 0x113   : > { %p1257_p11 = pneg %p1256_p10 }
 0x114   : > { %p1263_p2 = por %p1262_p1, %p1261_p0 }
 0x116   : > { %p1264_p4 = pnand %p1263_p2, %p1257_p11 }
 0x118   : > { %1267 = shalt.err (!%p1264_p4)
}
 0x119   : > { %1151 = dma.vmem_to_hbm [thread:$0]  (%p1504_p3), %s1585_s21, 64, %s1583_s15, %s786_s11   ;;  %v1103_v34 = vld [vmem:[%s555_s20] ss:$0 sm:$0xff] }
 0x11a   : > { %s1750_s30 = scalar_lea.vmem [#allocation7], %s1561_s18  ;;  %s506_s29 = scalar_lea.vmem [#allocation9], %s1561_s18 }
 0x11b   : > { %773 = vst.msk [vmem:[%s1750_s30] sm:$0xf] %vm761_vm3, %v772_v33  ;;  %s1634_s23 = sshll.u32 %s506_s29, 4  ;;  %s791_s13 = scalar_lea.sflag [#allocation8], %s1574_s24  ;;  %s845_s23 = int_to_ptr.vmem [resolvable:$true] %s1634_s23 }
 0x11c   : > { %s1268_s17 = scalar_lea.vmem %s1597_s26, 64  ;;  %s1399_s19 = smov [#allocation7]  }
 0x11d   : > { %p1269_p5 = scmp.ne.s32.totalorder %s1597_s26, %s1268_s17  ;;  %s1272_s21 = sshll.u32 %s1399_s19, 4  ;;  %s1273_s21 = int_to_ptr.vmem [resolvable:$false] %s1272_s21 }
 0x11e   : > { %s1274_s15 = scalar_lea.vmem %s1273_s21, 128  ;;  %p1275_p9 = scmp.lt.s32.totalorder %s1597_s26, %s1273_s21 }
 0x11f   : > { %p1270_p6 = pnand %p1269_p5, %p1504_p3  ;;  %p1276_p10 = scmp.lt.s32.totalorder %s1274_s15, %s1268_s17 }
 0x121   : > { %p1271_p7 = pneg %p1270_p6  ;;  %p1277_p11 = por %p1276_p10, %p1275_p9 }
 0x123   : > { %p1278_p12 = pnand %p1277_p11, %p1271_p7 }
 0x125   : > { %1281 = shalt.err (!%p1278_p12)
}
 0x126   : > { %s1282_s28 = scalar_lea.hbm %s1595_s12, 64  ;;  %s1286_s25 = scalar_lea.hbm %s1727_s8, 512 }
 0x127   : > { %p1283_p13 = scmp.ne.s32.totalorder %s1595_s12, %s1282_s28  ;;  %p1287_p2 = scmp.lt.u32.totalorder %s1595_s12, %s1727_s8 }
 0x128   : > { %p1288_p4 = scmp.lt.u32.totalorder %s1286_s25, %s1282_s28  ;;  %p1290_p6 = scmp.lt.u32.totalorder %s1282_s28, %s1595_s12 }
 0x129   : > { %p1284_p0 = pnand %p1283_p13, %p1504_p3 }
 0x12a   : > { %p1289_p5 = por %p1288_p4, %p1287_p2 }
 0x12b   : > { %p1285_p1 = pneg %p1284_p0 }
 0x12c   : > { %p1291_p7 = por %p1290_p6, %p1289_p5 }
 0x12e   : > { %p1292_p9 = pnand %p1291_p7, %p1285_p1 }
 0x130   : > { %1295 = shalt.err (!%p1292_p9)
}
 0x131   : > { %1152 = dma.vmem_to_hbm [thread:$0]  (%p1504_p3), %s1597_s26, 64, %s1595_s12, %s791_s13   ;;  %v774_v35 = vld [vmem:[#allocation4] sm:$0xff] }
 0x132   : > { %v782_v36 = vadd.f32 %v1103_v34, %v774_v35  ;;  %s1664_s21 = scalar_lea.hbm %s1728_s9, %s1568_s27  ;;  %s1296_s15 = scalar_lea.vmem %s845_s23, 64 }
 0x133   : > { %p1297_p10 = scmp.ne.s32.totalorder %s845_s23, %s1296_s15  ;;  %s1400_s28 = smov [#allocation9]  }
 0x134   : > { %v783_v37 = vpack.c.bf16 %v782_v36, %v782_v36  ;;  %s1300_s20 = sshll.u32 %s1400_s28, 4  ;;  %s1301_s20 = int_to_ptr.vmem [resolvable:$false] %s1300_s20 }
 0x135   : > { %p1298_p11 = pnand %p1297_p10, %p1504_p3  ;;  %s1302_s26 = scalar_lea.vmem %s1301_s20, 128 }
 0x136   : > { %784 = vst.msk [vmem:[%s506_s29] sm:$0xf] %vm761_vm3, %v783_v37  ;;  %p1303_p13 = scmp.lt.s32.totalorder %s845_s23, %s1301_s20  ;;  %p1304_p0 = scmp.lt.s32.totalorder %s1302_s26, %s1296_s15 }
 0x137   : > { %p1299_p12 = pneg %p1298_p11 }
 0x138   : > { %p1305_p1 = por %p1304_p0, %p1303_p13 }
 0x13a   : > { %p1306_p2 = pnand %p1305_p1, %p1299_p12 }
 0x13c   : > { %1309 = shalt.err (!%p1306_p2)
}
 0x13d   : > { %s1310_s18 = scalar_lea.hbm %s1664_s21, 64  ;;  %s1314_s29 = scalar_lea.hbm %s1728_s9, 512 }
 0x13e   : > { %p1311_p4 = scmp.ne.s32.totalorder %s1664_s21, %s1310_s18  ;;  %p1315_p7 = scmp.lt.u32.totalorder %s1664_s21, %s1728_s9 }
 0x13f   : > { %p1316_p9 = scmp.lt.u32.totalorder %s1314_s29, %s1310_s18  ;;  %p1318_p11 = scmp.lt.u32.totalorder %s1310_s18, %s1664_s21 }
 0x140   : > { %p1312_p5 = pnand %p1311_p4, %p1504_p3 }
 0x141   : > { %p1317_p10 = por %p1316_p9, %p1315_p7 }
 0x142   : > { %p1313_p6 = pneg %p1312_p5 }
 0x143   : > { %p1319_p12 = por %p1318_p11, %p1317_p10 }
 0x145   : > { %p1320_p13 = pnand %p1319_p12, %p1313_p6 }
 0x147   : > { %1323 = shalt.err (!%p1320_p13)
}
 0x148   : > { %1153 = dma.vmem_to_hbm [thread:$0]  (%p1504_p3), %s845_s23, 64, %s1664_s21, %s791_s13  }
 0x149 PF: > { %s1751_s14 = sld [smem:[#allocation12_spill]]  ;;  %p1167_p0 = scmp.ge.s32.totalorder %s1394_s16, 2 }
 0x14b   : > { %p1158_p1 = pnand %p1167_p0, %p1515_p8 }
 0x14f   : > { %s856_s17 = sand.u32 1, %s1751_s14  }
 0x150   : > { %s857_s19 = scalar_lea.sflag [#allocation6], %s856_s17 }
 0x151   : > { %1357 = dma.done.wait (!%p1158_p1), %s857_s19, 64  }
 0x152   : > { %1359 = vsyncadd (!%p1158_p1), %s857_s19, 4294967232  ;;  %s1753_s15 = sadd.s32 4294967294, %s1394_s16  }
 0x153   : > { %s865_s28 = sand.u32 1, %s1753_s15  }
 0x154   : > { %s866_s20 = scalar_lea.sflag [#allocation8], %s865_s28 }
 0x155   : > { %1361 = dma.done.wait (!%p1158_p1), %s866_s20, 128  }
 0x156   : > { %1363 = vsyncadd (!%p1158_p1), %s866_s20, 4294967168  ;;  %s26_s16 = sadd.s32 1, %s1394_s16   ;;  %s1754_s22 = sld [smem:[#allocation13_spill]] }
 0x157   : > { %p23_p3 = scmp.ge.s32.totalorder %s26_s16, 10   ;;  %s1755_s11 = sld [smem:[#allocation19_spill]] }
 0x158   : > { %s1756_s12 = sld [smem:[#allocation14_spill]]  ;;  %s1757_s13 = sld [smem:[#allocation15_spill]] }
 0x159   : > { %s1758_s14 = sld [smem:[#allocation16_spill]]  ;;  %s1759_s15 = sld [smem:[#allocation17_spill]] }
 0x15a   : > { %s1760_s30 = smov %s1370_s10  ;;  %25 = sbr.rel (!%p23_p3) target bundleno = 7 (0x7), region = 141 }
 0x15c   : > { %s1761_s10 = smov %s1754_s22 }
 0x161   :  { %880 = vsyncpa [#allocation6], 1 }
 0x162   :  { %882 = vsyncpa [#allocation6 + $0x1], 1 }
 0x163   :  { %883 = vsyncpa [#allocation8], 1 }
 0x164   :  { %885 = vsyncpa [#allocation8 + $0x1], 1 }

</bundles_post_ra>
